<compile_context>
chip_gen: v6e
topology: v6e:2x2x1
jax: 0.10.0
libtpu: 0.0.40
codegen_flags: <defaults>
</compile_context>

<pallas_src>
import jax
import jax.numpy as jnp
from jax.experimental import pallas as pl
from jax.experimental.pallas import tpu as pltpu


def _round_up(n, m):
    return ((n + m - 1) // m) * m


# -----------------------------------------------------------------------------
# Pallas kernel: one ponder step per grid index t.
#   h_t  = tanh(tanh(xproj[t] + h_{t-1} @ W_hh^T))   (RNNCell tanh + module tanh)
#   proj = h_t @ W_proj^T + b_proj
#   out  = blend(proj, relu(proj) + 1e-7)            (y_hat cols keep proj,
#                                                      lambda/pad cols get relu+eps)
# Hidden state is carried across grid steps in a VMEM scratch accumulator.
# -----------------------------------------------------------------------------
def _ponder_seq_kernel(xp_ref, h0_ref, whh_ref, wp_ref, bp_ref, mask_ref,
                       state_ref, proj_ref, h_scr):
    t = pl.program_id(0)

    @pl.when(t == 0)
    def _():
        h_scr[...] = h0_ref[...]

    pre = xp_ref[...] + jnp.dot(h_scr[...], whh_ref[...],
                                preferred_element_type=jnp.float32)
    h = jnp.tanh(jnp.tanh(pre))          # nn.RNNCell tanh, then module activation
    h_scr[...] = h
    state_ref[...] = h                   # lane/sublane-dense full store

    proj = (jnp.dot(h, wp_ref[...], preferred_element_type=jnp.float32)
            + bp_ref[...])
    lam = jnp.maximum(proj, 0.0) + 1e-7
    m = mask_ref[...]                    # 1.0 for y_hat columns, 0.0 otherwise
    proj_ref[...] = proj * m + lam * (1.0 - m)


# -----------------------------------------------------------------------------
# One-time parameter preprocessing (hoisted out of the step/sequence path).
# -----------------------------------------------------------------------------
def prepare_params(params, out_dim):
    state_dim = params["w_hh"].shape[0]
    total_out_dim = out_dim + 2
    state_pad = _round_up(state_dim, 128)
    out_pad = _round_up(total_out_dim, 128)

    w_ih_t = params["w_ih"].T.astype(jnp.float32)                      # (in_dim, state_dim)
    b_rnn = (params["b_ih"] + params["b_hh"]).astype(jnp.float32)      # (state_dim,)

    whh_t = jnp.pad(params["w_hh"].T.astype(jnp.float32),
                    ((0, state_pad - state_dim), (0, state_pad - state_dim)))
    wp = jnp.pad(params["w_proj"].T.astype(jnp.float32),
                 ((0, state_pad - state_dim), (0, out_pad - total_out_dim)))
    bp = jnp.pad(params["b_proj"].astype(jnp.float32).reshape(1, total_out_dim),
                 ((0, 0), (0, out_pad - total_out_dim)))
    mask = (jnp.arange(out_pad) < out_dim).astype(jnp.float32).reshape(1, out_pad)

    return {
        "w_ih_t": w_ih_t, "b_rnn": b_rnn, "whh_t": whh_t, "wp": wp, "bp": bp,
        "mask": mask, "state_dim": state_dim, "state_pad": state_pad,
        "out_pad": out_pad, "out_dim": out_dim, "total_out_dim": total_out_dim,
    }


# -----------------------------------------------------------------------------
# Sequence forward: applies PonderBayesianRNN.forward to xs[t] for t = 0..T-1,
# carrying the hidden state, in a single pallas_call.
# -----------------------------------------------------------------------------
def ponder_bayesian_rnn_sequence(xs, state, prepared, key):
    T, batch = xs.shape[0], xs.shape[1]
    state_dim = prepared["state_dim"]
    state_pad = prepared["state_pad"]
    out_pad = prepared["out_pad"]
    out_dim = prepared["out_dim"]
    batch_pad = _round_up(batch, 8)

    x2d = xs.reshape(T * batch, -1).astype(jnp.float32)

    # Input projection for the whole sequence: one big matmul (handled by XLA),
    # instead of a tiny fused [x, h] matmul every step.
    xproj = jnp.dot(x2d, prepared["w_ih_t"]) + prepared["b_rnn"]   # (T*batch, state_dim)
    xproj = xproj.reshape(T, batch, state_dim)
    xproj = jnp.pad(xproj, ((0, 0),
                            (0, batch_pad - batch),
                            (0, state_pad - state_dim)))
    xproj = xproj.reshape(T * batch_pad, state_pad)

    if state is None:
        h0 = jnp.zeros((batch_pad, state_pad), jnp.float32)
    else:
        h0 = jnp.pad(state.astype(jnp.float32),
                     ((0, batch_pad - batch), (0, state_pad - state_dim)))

    def const_spec(arr):
        # Constant index map -> DMA'd once, stays VMEM-resident across all T steps.
        return pl.BlockSpec(arr.shape, lambda t: (0, 0))

    states_pad, proj_pad = pl.pallas_call(
        _ponder_seq_kernel,
        out_shape=(
            jax.ShapeDtypeStruct((T * batch_pad, state_pad), jnp.float32),
            jax.ShapeDtypeStruct((T * batch_pad, out_pad), jnp.float32),
        ),
        grid_spec=pltpu.PrefetchScalarGridSpec(
            num_scalar_prefetch=0,
            grid=(T,),
            in_specs=[
                pl.BlockSpec((batch_pad, state_pad), lambda t: (t, 0)),  # xproj[t]
                const_spec(h0),
                const_spec(prepared["whh_t"]),
                const_spec(prepared["wp"]),
                const_spec(prepared["bp"]),
                const_spec(prepared["mask"]),
            ],
            out_specs=(
                pl.BlockSpec((batch_pad, state_pad), lambda t: (t, 0)),  # state[t]
                pl.BlockSpec((batch_pad, out_pad), lambda t: (t, 0)),    # proj[t]
            ),
            scratch_shapes=[pltpu.VMEM((batch_pad, state_pad), jnp.float32)],
        ),
        compiler_params=pltpu.CompilerParams(
            dimension_semantics=("arbitrary",)),       # sequential recurrence over T
    )(xproj, h0, prepared["whh_t"], prepared["wp"], prepared["bp"],
      prepared["mask"])

    states = states_pad.reshape(T, batch_pad, state_pad)[:, :batch, :state_dim]
    proj = proj_pad.reshape(T, batch_pad, out_pad)[:, :batch, :]
    y_hat = proj[..., :out_dim]
    alpha = proj[..., out_dim]
    beta = proj[..., out_dim + 1]

    # TODO(synk): Beta.rsample (reparameterized via rejection-sampled gammas)
    # has no clean Pallas equivalent; sampled with plain JAX RNG here.
    lambda_n = jax.random.beta(key, alpha, beta)

    return y_hat, states, lambda_n, (alpha, beta)


def ponder_bayesian_rnn_forward(x, state, prepared, key):
    """Single-step equivalent of PonderBayesianRNN.forward(x, state)."""
    y_hat, states, lambda_n, (alpha, beta) = ponder_bayesian_rnn_sequence(
        x[None], state, prepared, key)
    return y_hat[0], states[0], lambda_n[0], (alpha[0], beta[0])


def init_params(key, in_dim, state_dim, out_dim):
    """Deterministic init mimicking PyTorch's uniform(-1/sqrt(h), 1/sqrt(h))."""
    total_out_dim = out_dim + 2
    ks = jax.random.split(key, 6)
    k_rnn = 1.0 / jnp.sqrt(state_dim)
    k_proj = 1.0 / jnp.sqrt(state_dim)
    u = lambda k, shape, b: jax.random.uniform(k, shape, jnp.float32, -b, b)
    return {
        "w_ih": u(ks[0], (state_dim, in_dim), k_rnn),
        "w_hh": u(ks[1], (state_dim, state_dim), k_rnn),
        "b_ih": u(ks[2], (state_dim,), k_rnn),
        "b_hh": u(ks[3], (state_dim,), k_rnn),
        "w_proj": u(ks[4], (total_out_dim, state_dim), k_proj),
        "b_proj": u(ks[5], (total_out_dim,), k_proj),
    }


if __name__ == "__main__":
    T, batch, out_dim, state_dim, spatial = 8, 4, 3, 32, 4
    in_dim = spatial * spatial

    root = jax.random.PRNGKey(0)
    k_x, k_params, k_seq, k_step = jax.random.split(root, 4)

    xs = jax.random.normal(k_x, (T, batch, spatial, spatial), jnp.float32)
    params = init_params(k_params, in_dim, state_dim, out_dim)
    prepared = prepare_params(params, out_dim)

    # Full-sequence (time-gridded) kernel.
    y_hat, states, lambda_n, (alpha, beta) = ponder_bayesian_rnn_sequence(
        xs, None, prepared, k_seq)
    jax.block_until_ready((y_hat, states, lambda_n, alpha, beta))

    assert y_hat.shape == (T, batch, out_dim)
    assert states.shape == (T, batch, state_dim)
    assert lambda_n.shape == (T, batch)
    assert alpha.shape == (T, batch) and beta.shape == (T, batch)
    assert bool(jnp.all(alpha > 0)) and bool(jnp.all(beta > 0))

    # Plain-JAX reference recurrence.
    h = jnp.zeros((batch, state_dim), jnp.float32)
    ref_states, ref_proj = [], []
    for t in range(T):
        x2d = xs[t].reshape(batch, -1)
        h = jnp.tanh(jnp.tanh(x2d @ params["w_ih"].T + params["b_ih"]
                              + h @ params["w_hh"].T + params["b_hh"]))
        ref_states.append(h)
        ref_proj.append(h @ params["w_proj"].T + params["b_proj"])
    ref_states = jnp.stack(ref_states)
    ref_proj = jnp.stack(ref_proj)

    assert jnp.allclose(states, ref_states, atol=1e-4, rtol=1e-4)
    assert jnp.allclose(y_hat, ref_proj[..., :out_dim], atol=1e-4, rtol=1e-4)
    assert jnp.allclose(alpha, jnp.maximum(ref_proj[..., out_dim], 0.0) + 1e-7,
                        atol=1e-4, rtol=1e-4)
    assert jnp.allclose(beta, jnp.maximum(ref_proj[..., out_dim + 1], 0.0) + 1e-7,
                        atol=1e-4, rtol=1e-4)

    # Single-step path (original module forward signature), incl. carried state.
    y1, s1, l1, (a1, b1) = ponder_bayesian_rnn_forward(xs[0], None, prepared, k_step)
    jax.block_until_ready((y1, s1, l1))
    assert y1.shape == (batch, out_dim) and s1.shape == (batch, state_dim)
    assert l1.shape == (batch,) and a1.shape == (batch,) and b1.shape == (batch,)
    assert jnp.allclose(s1, ref_states[0], atol=1e-4, rtol=1e-4)

    y2, s2, l2, (a2, b2) = ponder_bayesian_rnn_forward(xs[1], s1, prepared, k_step)
    jax.block_until_ready((y2, s2, l2))
    assert jnp.allclose(s2, ref_states[1], atol=1e-4, rtol=1e-4)
    assert jnp.allclose(y2, ref_proj[1, :, :out_dim], atol=1e-4, rtol=1e-4)

    print("KERNEL_OK")
</pallas_src>

<mosaic_0001>
module attributes {stable_mosaic.version = 11 : i64} {
  func.func @_ponder_seq_kernel(%arg0: i32, %arg1: memref<8x128xf32, #tpu.memory_space<vmem>>, %arg2: memref<8x128xf32, #tpu.memory_space<vmem>>, %arg3: memref<128x128xf32, #tpu.memory_space<vmem>>, %arg4: memref<128x128xf32, #tpu.memory_space<vmem>>, %arg5: memref<1x128xf32, #tpu.memory_space<vmem>>, %arg6: memref<1x128xf32, #tpu.memory_space<vmem>>, %arg7: memref<8x128xf32, #tpu.memory_space<vmem>>, %arg8: memref<8x128xf32, #tpu.memory_space<vmem>>, %arg9: memref<8x128xf32, #tpu.memory_space<vmem>>) attributes {dimension_semantics = [#tpu.dimension_semantics<arbitrary>], iteration_bounds = array<i64: 8>, scalar_prefetch = 0 : i64, scratch_operands = 1 : i64, tpu.core_type = #tpu.core_type<tc>, window_params = [{transform_indices = @transform_0, window_bounds = array<i64: 8, 128>}, {pipeline_mode = #tpu.pipeline_mode<synchronous>, transform_indices = @transform_1, window_bounds = array<i64: 8, 128>}, {pipeline_mode = #tpu.pipeline_mode<synchronous>, transform_indices = @transform_2, window_bounds = array<i64: 128, 128>}, {pipeline_mode = #tpu.pipeline_mode<synchronous>, transform_indices = @transform_3, window_bounds = array<i64: 128, 128>}, {pipeline_mode = #tpu.pipeline_mode<synchronous>, transform_indices = @transform_4, window_bounds = array<i64: 1, 128>}, {pipeline_mode = #tpu.pipeline_mode<synchronous>, transform_indices = @transform_5, window_bounds = array<i64: 1, 128>}, {transform_indices = @transform_6, window_bounds = array<i64: 8, 128>}, {transform_indices = @transform_7, window_bounds = array<i64: 8, 128>}]} {
    %c0_i32 = arith.constant 0 : i32
    %0 = arith.cmpi eq, %arg0, %c0_i32 : i32
    %1 = arith.extui %0 : i1 to i32
    %c0_i32_0 = arith.constant 0 : i32
    %2 = arith.cmpi ne, %1, %c0_i32_0 : i32
    scf.if %2 {
      %c0_22 = arith.constant 0 : index
      %c0_23 = arith.constant 0 : index
      %30 = vector.load %arg2[%c0_22, %c0_23] : memref<8x128xf32, #tpu.memory_space<vmem>>, vector<8x128xf32>
      %c0_24 = arith.constant 0 : index
      %c0_25 = arith.constant 0 : index
      %31 = vector.load %arg9[%c0_24, %c0_25] : memref<8x128xf32, #tpu.memory_space<vmem>>, vector<8x128xf32>
      tpu.vector_store %arg9[%c0_24, %c0_25], %30 {strides = array<i32>} : memref<8x128xf32, #tpu.memory_space<vmem>>, vector<8x128xf32>,
    } else {
    }
    %c0 = arith.constant 0 : index
    %c0_1 = arith.constant 0 : index
    %3 = vector.load %arg1[%c0, %c0_1] : memref<8x128xf32, #tpu.memory_space<vmem>>, vector<8x128xf32>
    %c0_2 = arith.constant 0 : index
    %c0_3 = arith.constant 0 : index
    %4 = vector.load %arg9[%c0_2, %c0_3] : memref<8x128xf32, #tpu.memory_space<vmem>>, vector<8x128xf32>
    %c0_4 = arith.constant 0 : index
    %c0_5 = arith.constant 0 : index
    %5 = vector.load %arg3[%c0_4, %c0_5] : memref<128x128xf32, #tpu.memory_space<vmem>>, vector<128x128xf32>
    %cst = arith.constant dense<0.000000e+00> : vector<8x128xf32>
    %6 = tpu.matmul %4, %5, %cst {dimension_numbers = #tpu.dot_dimension_numbers<[1], [0], [0], [1], [0, 0, 1, 1], [], []>} : vector<8x128xf32>, vector<128x128xf32>, vector<8x128xf32> -> vector<8x128xf32>
    %7 = arith.addf %3, %6 : vector<8x128xf32>
    %8 = math.tanh %7 : vector<8x128xf32>
    %9 = math.tanh %8 : vector<8x128xf32>
    %c0_6 = arith.constant 0 : index
    %c0_7 = arith.constant 0 : index
    %10 = vector.load %arg9[%c0_6, %c0_7] : memref<8x128xf32, #tpu.memory_space<vmem>>, vector<8x128xf32>
    tpu.vector_store %arg9[%c0_6, %c0_7], %9 {strides = array<i32>} : memref<8x128xf32, #tpu.memory_space<vmem>>, vector<8x128xf32>,
    %c0_8 = arith.constant 0 : index
    %c0_9 = arith.constant 0 : index
    %11 = vector.load %arg7[%c0_8, %c0_9] : memref<8x128xf32, #tpu.memory_space<vmem>>, vector<8x128xf32>
    tpu.vector_store %arg7[%c0_8, %c0_9], %9 {strides = array<i32>} : memref<8x128xf32, #tpu.memory_space<vmem>>, vector<8x128xf32>,
    %c0_10 = arith.constant 0 : index
    %c0_11 = arith.constant 0 : index
    %12 = vector.load %arg4[%c0_10, %c0_11] : memref<128x128xf32, #tpu.memory_space<vmem>>, vector<128x128xf32>
    %cst_12 = arith.constant dense<0.000000e+00> : vector<8x128xf32>
    %13 = tpu.matmul %9, %12, %cst_12 {dimension_numbers = #tpu.dot_dimension_numbers<[1], [0], [0], [1], [0, 0, 1, 1], [], []>} : vector<8x128xf32>, vector<128x128xf32>, vector<8x128xf32> -> vector<8x128xf32>
    %c0_13 = arith.constant 0 : index
    %c0_14 = arith.constant 0 : index
    %14 = vector.load %arg5[%c0_13, %c0_14] : memref<1x128xf32, #tpu.memory_space<vmem>>, vector<1x128xf32>
    %15 = vector.broadcast %14 : vector<1x128xf32> to vector<8x128xf32>
    %16 = arith.addf %13, %15 : vector<8x128xf32>
    %cst_15 = arith.constant 0.000000e+00 : f32
    %17 = vector.broadcast %cst_15 : f32 to vector<8x128xf32>
    %18 = arith.maximumf %16, %17 : vector<8x128xf32>
    %cst_16 = arith.constant 1.000000e-07 : f32
    %19 = vector.broadcast %cst_16 : f32 to vector<8x128xf32>
    %20 = arith.addf %18, %19 : vector<8x128xf32>
    %c0_17 = arith.constant 0 : index
    %c0_18 = arith.constant 0 : index
    %21 = vector.load %arg6[%c0_17, %c0_18] : memref<1x128xf32, #tpu.memory_space<vmem>>, vector<1x128xf32>
    %22 = vector.broadcast %21 : vector<1x128xf32> to vector<8x128xf32>
    %23 = arith.mulf %16, %22 : vector<8x128xf32>
    %cst_19 = arith.constant 1.000000e+00 : f32
    %24 = vector.broadcast %cst_19 : f32 to vector<1x128xf32>
    %25 = arith.subf %24, %21 : vector<1x128xf32>
    %26 = vector.broadcast %25 : vector<1x128xf32> to vector<8x128xf32>
    %27 = arith.mulf %20, %26 : vector<8x128xf32>
    %28 = arith.addf %23, %27 : vector<8x128xf32>
    %c0_20 = arith.constant 0 : index
    %c0_21 = arith.constant 0 : index
    %29 = vector.load %arg8[%c0_20, %c0_21] : memref<8x128xf32, #tpu.memory_space<vmem>>, vector<8x128xf32>
    tpu.vector_store %arg8[%c0_20, %c0_21], %28 {strides = array<i32>} : memref<8x128xf32, #tpu.memory_space<vmem>>, vector<8x128xf32>,
    return
  }
  func.func @transform_0(%arg0: i32) -> (i32, i32) {
    %c0_i32 = arith.constant 0 : i32
    %c0_i32_0 = arith.constant 0 : i32
    return %arg0, %c0_i32 : i32, i32
  }
  func.func @transform_1(%arg0: i32) -> (i32, i32) {
    %c0_i32 = arith.constant 0 : i32
    %c0_i32_0 = arith.constant 0 : i32
    %c0_i32_1 = arith.constant 0 : i32
    return %c0_i32, %c0_i32_0 : i32, i32
  }
  func.func @transform_2(%arg0: i32) -> (i32, i32) {
    %c0_i32 = arith.constant 0 : i32
    %c0_i32_0 = arith.constant 0 : i32
    %c0_i32_1 = arith.constant 0 : i32
    return %c0_i32, %c0_i32_0 : i32, i32
  }
  func.func @transform_3(%arg0: i32) -> (i32, i32) {
    %c0_i32 = arith.constant 0 : i32
    %c0_i32_0 = arith.constant 0 : i32
    %c0_i32_1 = arith.constant 0 : i32
    return %c0_i32, %c0_i32_0 : i32, i32
  }
  func.func @transform_4(%arg0: i32) -> (i32, i32) {
    %c0_i32 = arith.constant 0 : i32
    %c0_i32_0 = arith.constant 0 : i32
    %c0_i32_1 = arith.constant 0 : i32
    return %c0_i32, %c0_i32_0 : i32, i32
  }
  func.func @transform_5(%arg0: i32) -> (i32, i32) {
    %c0_i32 = arith.constant 0 : i32
    %c0_i32_0 = arith.constant 0 : i32
    %c0_i32_1 = arith.constant 0 : i32
    return %c0_i32, %c0_i32_0 : i32, i32
  }
  func.func @transform_6(%arg0: i32) -> (i32, i32) {
    %c0_i32 = arith.constant 0 : i32
    %c0_i32_0 = arith.constant 0 : i32
    return %arg0, %c0_i32 : i32, i32
  }
  func.func @transform_7(%arg0: i32) -> (i32, i32) {
    %c0_i32 = arith.constant 0 : i32
    %c0_i32_0 = arith.constant 0 : i32
    return %arg0, %c0_i32 : i32, i32
  }
}

</mosaic_0001>

<bundles_post_ra>
// kernel: tpu_custom_call.1
= control target key start
LH: loop header
LB: loop body
LE: loop exit
PB: predicated region body
PF: predicated region fallthrough
CT: control target
= control target key end

     0   :  { %s1452_s0 = inlined_call_operand.hbm [shape: f32[64,128], index: 0, kind: input, shape index: {}]   ;;  %s1453_s1 = inlined_call_operand.hbm [shape: f32[8,128], index: 1, kind: input, shape index: {}]   ;;  %s1454_s2 = inlined_call_operand.hbm [shape: f32[128,128], index: 2, kind: input, shape index: {}]   ;;  %s1455_s3 = inlined_call_operand.hbm [shape: f32[128,128], index: 3, kind: input, shape index: {}]   ;;  %s1456_s4 = inlined_call_operand.vmem [shape: f32[1,128], index: 4, kind: input, shape index: {}]   ;;  %s1457_s5 = inlined_call_operand.vmem [shape: f32[1,128], index: 5, kind: input, shape index: {}]   ;;  %s1458_s6 = inlined_call_operand.hbm [shape: f32[64,128], index: 6, kind: output, shape index: {0}]   ;;  %s1459_s7 = inlined_call_operand.hbm [shape: f32[64,128], index: 7, kind: output, shape index: {1}]  }
   0x1   :  { %1465 = sst [smem:[#allocation19_spill]] %s1453_s1 }
   0x2   :  { %1466 = sst [smem:[#allocation20_spill]] %s1454_s2 }
   0x3   :  { %13 = vsyncpa [#allocation4], 0 }
   0x4   :  { %15 = vsyncpa [#allocation4 + $0x1], 0 }
   0x5   :  { %16 = vsyncpa [#allocation7], 0 }
   0x6   :  { %17 = vsyncpa [#allocation10], 0 }
   0x7   :  { %18 = vsyncpa [#allocation5], 0 }
   0x8   :  { %20 = vsyncpa [#allocation5 + $0x1], 0 }
   0x9   :  { %21 = vsyncpa [#allocation13], 0 }
   0xa   :  { %23 = vsyncpa [#allocation13 + $0x1], 0  ;;  %s1199_s24 = smov 0   ;;  %s1201_s25 = smov 0  }
   0xb   :  { %s1203_s26 = smov 0   ;;  %s1205_s27 = smov 0  }
   0xc LB: > { %s1220_s28 = sadd.s32 4294967295, %s1147_s27   ;;  %s722_s29 = sadd.s32 4294967294, %s1147_s27   ;;  %s1147_s27 = sphi %s1205_s27, %s1489_s27   ;;  %s1143_s26 = sphi %s1203_s26, %s1488_s26   ;;  %s1139_s25 = sphi %s1201_s25, %s1487_s25   ;;  %s1135_s24 = sphi %s1199_s24, %s1486_s24  }
   0xd   : > { %p49_p0 = scmp.ne.s32.totalorder %s1139_s25, %s1135_s24  ;;  %p1460_p1 = scmp.eq.s32.totalorder %s1220_s28, 0 }
   0xe   : > { %p184_p3 = scmp.eq.s32.totalorder %s722_s29, 7  ;;  %p723_p5 = scmp.ge.s32.totalorder %s1147_s27, 1 }
   0xf   : > { %p1229_p4 = por %p1460_p1, %p49_p0  ;;  %p217_p7 = scmp.lt.s32.totalorder %s1147_s27, 9 }
  0x10   : > { %p1234_p6 = por %p184_p3, %p49_p0  ;;  %s1149_s10 = smov [#allocation6]  }
  0x11   : > { %s1467_s30 = scalar_select %p1229_p4, 1, 0 }
  0x12   : > { %s1468_s8 = scalar_select %p1234_p6, 1, 0 }
  0x13   : > { %p1240_p9 = pnand %p723_p5, %p217_p7  ;;  %s230_s11 = sshll.u32 %s1149_s10, 4  ;;  %s231_s11 = int_to_ptr.vmem [resolvable:$true] %s230_s11 }
  0x14   : > { %s1150_s12 = smov [#allocation8]   ;;  %s1151_s15 = smov [#allocation9]  }
  0x15   : > { %s1469_s9 = scalar_select %p1240_p9, 1, 0 }
  0x16   : > { %p867_p10 = pneg %p1240_p9  ;;  %s240_s13 = sshll.u32 %s1150_s12, 4  ;;  %s241_s13 = int_to_ptr.vmem [resolvable:$true] %s240_s13 }
  0x17   : > { %s253_s16 = sshll.u32 %s1151_s15, 4  ;;  %s950_s17 = scalar_lea.vmem %s231_s11, 128  ;;  %s254_s16 = int_to_ptr.vmem [resolvable:$true] %s253_s16 }
  0x18   : > { %p1248_p11 = pnand %p867_p10, %p1460_p1  ;;  %p951_p13 = scmp.ne.s32.totalorder %s231_s11, %s950_s17 }
  0x19   : > { %p958_p5 = scmp.lt.s32.totalorder %s231_s11, %s231_s11  ;;  %p959_p7 = scmp.lt.s32.totalorder %s950_s17, %s950_s17 }
  0x1a   : > { %p941_p12 = pneg %p1248_p11 }
  0x1b   : > { %p960_p8 = por %p959_p7, %p958_p5 }
  0x1c   : > { %p953_p0 = pnand %p951_p13, %p941_p12 }
  0x1e   : > { %p954_p3 = pneg %p953_p0 }
  0x20   : > { %p961_p10 = pnand %p960_p8, %p954_p3 }
  0x22   : > { %964 = shalt.err (!%p961_p10)
}
  0x23   : > { %s1471_s1 = sld [smem:[#allocation19_spill]]  ;;  %s976_s20 = scalar_lea.vmem %s241_s13, 2048 }
  0x24   : > { %p977_p1 = scmp.ne.s32.totalorder %s241_s13, %s976_s20  ;;  %p984_p13 = scmp.lt.s32.totalorder %s241_s13, %s241_s13 }
  0x25   : > { %p985_p0 = scmp.lt.s32.totalorder %s976_s20, %s976_s20 }
  0x26   : > { %p979_p2 = pnand %p977_p1, %p941_p12 }
  0x27   : > { %p986_p4 = por %p985_p0, %p984_p13 }
  0x28   : > { %p980_p6 = pneg %p979_p2 }
  0x29   : > { %870 = dma.hbm_to_vmem [thread:$0]  (!%p1248_p11), %s1471_s1, 128, %s231_s11, [#allocation7]  }
  0x2a   : > { %p987_p9 = pnand %p986_p4, %p980_p6 }
  0x2c   : > { %990 = shalt.err (!%p987_p9)
}
  0x2d   : > { %s1152_s21 = smov 128   ;;  %s1153_s22 = smov 8  }
  0x2e   : > { %s1472_s2 = sld [smem:[#allocation20_spill]]  ;;  %s1002_s10 = scalar_lea.vmem %s254_s16, 2048 }
  0x2f   : > { %p1003_p8 = scmp.ne.s32.totalorder %s254_s16, %s1002_s10  ;;  %p1010_p3 = scmp.lt.s32.totalorder %s254_s16, %s254_s16 }
  0x30   : > { %p1011_p5 = scmp.lt.s32.totalorder %s1002_s10, %s1002_s10 }
  0x31   : > { %p1005_p1 = pnand %p1003_p8, %p941_p12 }
  0x32   : > { %p1012_p4 = por %p1011_p5, %p1010_p3 }
  0x33   : > { %p1006_p2 = pneg %p1005_p1 }
  0x34   : > { %873 = dma.hbm_to_vmem [thread:$0]  (!%p1248_p11), %s1472_s2, 2048, %s241_s13, [#allocation7], %s1152_s21, %s1152_s21, %s1153_s22  }
  0x35   : > { %p1013_p6 = pnand %p1012_p4, %p1006_p2 }
  0x37   : > { %1016 = shalt.err (!%p1013_p6)
}
  0x38   : > { %876 = dma.hbm_to_vmem [thread:$0]  (!%p1248_p11), %s1455_s3, 2048, %s254_s16, [#allocation10], %s1152_s21, %s1152_s21, %s1153_s22  }
  0x39   : > { %s1279_s13 = sadd.s32 1, %s1147_s27   ;;  %s36_s14 = sadd.s32 1, %s1143_s26 }
  0x3a   : > { %s33_s15 = ssub.s32 %s1147_s27, %s1279_s13  ;;  %p43_p12 = scmp.ne.s32.totalorder %s1143_s26, %s1139_s25 }
  0x3b   : > { %p34_p9 = scmp.eq.s32.totalorder %s33_s15, 0  ;;  %p44_p7 = scmp.eq.s32.totalorder %s1147_s27, 0 }
  0x3c   : > { %p891_p10 = scmp.lt.s32.totalorder %s1147_s27, 8  ;;  %p1473_p0 = scmp.eq.s32.totalorder %s1220_s28, 7 }
  0x3d   : > { %s1289_s17 = scalar_select %p34_p9, %s1143_s26, %s36_s14  }
  0x3e   : > { %p45_p13 = por %p44_p7, %p43_p12  ;;  %p1293_p8 = por %p1473_p0, %p43_p12 }
  0x3f   : > { %s273_s19 = sand.u32 1, %s1143_s26   ;;  %s729_s20 = sshll.u32 %s1147_s27, 7 }
  0x40   : > { %s1474_s18 = scalar_select %p1293_p8, 1, 0 }
  0x41   : > { %s728_s16 = sshll.u32 %s273_s19, 3  ;;  %s1302_s23 = scalar_lea.hbm %s1452_s0, %s729_s20 }
  0x42   : > { %s277_s29 = scalar_lea.vmem [#allocation3], %s728_s16  ;;  %p1304_p11 = pnand %p891_p10, %p45_p13 }
  0x43   : > { %s284_s10 = sshll.u32 %s277_s29, 4  ;;  %s274_s12 = scalar_lea.sflag [#allocation4], %s273_s19  ;;  %s285_s10 = int_to_ptr.vmem [resolvable:$true] %s284_s10 }
  0x44   : > { %s1017_s15 = scalar_lea.hbm %s1302_s23, 128  ;;  %p1019_p2 = pneg %p1304_p11 }
  0x45   : > { %p1018_p1 = scmp.ne.s32.totalorder %s1302_s23, %s1017_s15  ;;  %s1022_s21 = scalar_lea.hbm %s1452_s0, 1024 }
  0x46   : > { %p1023_p4 = scmp.lt.s32.totalorder %s1302_s23, %s1452_s0  ;;  %p1024_p6 = scmp.lt.s32.totalorder %s1022_s21, %s1017_s15 }
  0x47   : > { %p1020_p3 = pnand %p1019_p2, %p1018_p1 }
  0x48   : > { %p1025_p9 = por %p1024_p6, %p1023_p4 }
  0x49   : > { %p1021_p5 = pneg %p1020_p3 }
  0x4b   : > { %p1026_p12 = pnand %p1025_p9, %p1021_p5 }
  0x4d   : > { %1029 = shalt.err (!%p1026_p12)
}
  0x4e   : > { %s1030_s29 = scalar_lea.vmem %s285_s10, 128  ;;  %s1154_s19 = smov [#allocation3]  }
  0x4f   : > { %p1031_p7 = scmp.ne.s32.totalorder %s285_s10, %s1030_s29  ;;  %s1035_s1 = sshll.u32 %s1154_s19, 4  ;;  %s1036_s1 = int_to_ptr.vmem [resolvable:$false] %s1035_s1 }
  0x50   : > { %s1037_s2 = scalar_lea.vmem %s1036_s1, 256  ;;  %p1038_p0 = scmp.lt.s32.totalorder %s285_s10, %s1036_s1 }
  0x51   : > { %p1033_p10 = pnand %p1031_p7, %p1019_p2  ;;  %p1039_p1 = scmp.lt.s32.totalorder %s1037_s2, %s1030_s29 }
  0x53   : > { %p1034_p13 = pneg %p1033_p10  ;;  %p1040_p3 = por %p1039_p1, %p1038_p0 }
  0x55   : > { %p1041_p8 = pnand %p1040_p3, %p1034_p13 }
  0x57   : > { %1044 = shalt.err (!%p1041_p8)
}
  0x58   : > { %880 = dma.hbm_to_vmem [thread:$0]  (!%p1304_p11), %s1302_s23, 128, %s285_s10, %s274_s12  }
  0x59   : > { %p1476_p5 = scmp.ne.s32.totalorder %s1469_s9, 0 }
  0x5a   : > { %s1325_s15 = sand.u32 (!%p1476_p5), 1, %s1139_s25   ;;  %p1477_p2 = scmp.ne.s32.totalorder (!%p1476_p5), %s1467_s30, 0 }
  0x5b   : > { %293 = sbr.rel (%p1476_p5) target bundleno = 585 (0x249), region = 44  ;;  %s1328_s14 = sshll.u32 (!%p1476_p5), %s1325_s15, 3 }
  0x5c   : > { %s296_s1 = scalar_lea.sflag (!%p1476_p5), [#allocation4], %s1325_s15  ;;  %s299_s2 = scalar_lea.vmem (!%p1476_p5), [#allocation3], %s1328_s14 }
  0x60   : > { %1114 = dma.done.wait (%p1477_p2), %s296_s1, 128  }
  0x61   : > { %1116 = vsyncadd (%p1477_p2), %s296_s1, 4294967168  ;;  %p1478_p8 = scmp.eq.s32.totalorder %s1220_s28, 0 }
  0x63   : > { %1118 = dma.done.wait (%p1478_p8), [#allocation7], 2176   ;;  %p1479_p11 = pmov %p1478_p8 }
  0x64   : > { %p1480_p4 = pmov %p1478_p8 }
  0x65   : > { %1120 = vsyncadd (%p1479_p11), [#allocation7], 4294965120 }
  0x66   : > { %1122 = dma.done.wait (%p1480_p4), [#allocation10], 2048   ;;  %p1481_p6 = pmov %p1480_p4 }
  0x67   : > { %s339_s9 = scalar_lea.vmem [#allocation11], %s1328_s14  ;;  %s346_s23 = scalar_lea.vmem [#allocation12], %s1328_s14 }
  0x68   : > { %1124 = vsyncadd (%p1481_p6), [#allocation10], 4294965248  ;;  %p1482_p9 = scmp.ne.s32.totalorder %s1220_s28, 0 }
  0x6a   : > { %350 = sbr.rel (%p1482_p9) target bundleno = 113 (0x71), region = 64 }
  0x6f   : > { %v351_v0 = vld [vmem:[#allocation6] sm:$0xff] }
  0x70   : > { %352 = vst [vmem:[#allocation2] sm:$0xff] %v351_v0 }
  0x71 PF: > { %v370_v1 = vld [vmem:[#allocation8 + $0x78] sm:$0xff]  ;;  %v1155_v2 = vmov 0.0   ;;  %v369_v3 = vld [vmem:[#allocation8 + $0x70] sm:$0xff]  ;;  %vm1156_vm0 = vmmov 0   ;;  %v368_v4 = vld [vmem:[#allocation8 + $0x68] sm:$0xff]  ;;  %s1464_s30 = sshll.u32 %s1220_s28, 7 }
  0x72   : > { %779 = vmatprep.subr.mxu0 %v1155_v2  ;;  %811 = vmatprep.mubr.msk.f32.mxu0 %vm1156_vm0, %v1155_v2  ;;  %v367_v5 = vld [vmem:[#allocation8 + $0x60] sm:$0xff]  ;;  %v366_v6 = vld [vmem:[#allocation8 + $0x58] sm:$0xff]  ;;  %v365_v7 = vld [vmem:[#allocation8 + $0x50] sm:$0xff]  ;;  %s576_s12 = scalar_lea.hbm %s1458_s6, %s1464_s30  ;;  %s578_s20 = sshll.u32 %s339_s9, 4  ;;  %s579_s20 = int_to_ptr.vmem [resolvable:$true] %s578_s20 }
  0x73   : > { %780 = vmatpush3.msra.mxu0 %v370_v1  ;;  %814 = vmatprep.subr.mxu1 %v1155_v2  ;;  %v364_v8 = vld [vmem:[#allocation8 + $0x48] sm:$0xff]  ;;  %v363_v9 = vld [vmem:[#allocation8 + $0x40] sm:$0xff]  ;;  %v362_v10 = vld [vmem:[#allocation8 + $0x38] sm:$0xff]  ;;  %s560_s21 = scalar_lea.sflag [#allocation5], %s1325_s15  ;;  %s1045_s22 = scalar_lea.vmem %s579_s20, 128 }
  0x74   : > { %781 = vmatprep.subr.mxu0 %v1155_v2  ;;  %846 = vmatprep.mubr.msk.f32.mxu1 %vm1156_vm0, %v1155_v2  ;;  %v361_v11 = vld [vmem:[#allocation8 + $0x30] sm:$0xff]  ;;  %v360_v12 = vld [vmem:[#allocation8 + $0x28] sm:$0xff]  ;;  %v359_v13 = vld [vmem:[#allocation8 + $0x20] sm:$0xff]  ;;  %p1046_p12 = scmp.ne.s32.totalorder %s579_s20, %s1045_s22  ;;  %p1483_p7 = scmp.ne.s32.totalorder %s1474_s18, 0 }
  0x75   : > { %782 = vmatpush3.msra.mxu0 %v369_v3  ;;  %v358_v14 = vld [vmem:[#allocation8 + $0x18] sm:$0xff]  ;;  %v357_v15 = vld [vmem:[#allocation8 + $0x10] sm:$0xff]  ;;  %v356_v16 = vld [vmem:[#allocation8 + $0x8] sm:$0xff]  ;;  %s1157_s16 = smov [#allocation11]  }
  0x76   : > { %783 = vmatprep.subr.mxu0 %v1155_v2  ;;  %v355_v17 = vld [vmem:[#allocation8] sm:$0xff]  ;;  %v461_v19 = vld [vmem:[#allocation9 + $0x78] sm:$0xff]  ;;  %v460_v20 = vld [vmem:[#allocation9 + $0x70] sm:$0xff]  ;;  %p1047_p10 = pnand %p1046_p12, %p1483_p7  ;;  %s1049_s29 = sshll.u32 %s1157_s16, 4  ;;  %s1050_s29 = int_to_ptr.vmem [resolvable:$false] %s1049_s29 }
  0x77   : > { %784 = vmatpush3.msra.mxu0 %v368_v4  ;;  %v354_v18 = vld [vmem:[#allocation2] sm:$0xff]  ;;  %815 = vmatpush3.msra.mxu1 %v461_v19  ;;  %v459_v21 = vld [vmem:[#allocation9 + $0x68] sm:$0xff]  ;;  %v457_v23 = vld [vmem:[#allocation9 + $0x58] sm:$0xff]  ;;  %s1051_s19 = scalar_lea.vmem %s1050_s29, 256  ;;  %p1052_p0 = scmp.lt.s32.totalorder %s579_s20, %s1050_s29 }
  0x78   : > { %785 = vmatprep.subr.mxu0 %v1155_v2  ;;  %816 = vmatprep.subr.mxu1 %v1155_v2  ;;  %v458_v22 = vld [vmem:[#allocation9 + $0x60] sm:$0xff]  ;;  %v456_v24 = vld [vmem:[#allocation9 + $0x50] sm:$0xff]  ;;  %v455_v25 = vld [vmem:[#allocation9 + $0x48] sm:$0xff]  ;;  %p1048_p13 = pneg %p1047_p10  ;;  %p1053_p1 = scmp.lt.s32.totalorder %s1051_s19, %s1045_s22 }
  0x79   : > { %786 = vmatpush3.msra.mxu0 %v367_v5  ;;  %817 = vmatpush3.msra.mxu1 %v460_v20  ;;  %v454_v26 = vld [vmem:[#allocation9 + $0x40] sm:$0xff]  ;;  %v453_v27 = vld [vmem:[#allocation9 + $0x38] sm:$0xff]  ;;  %v452_v28 = vld [vmem:[#allocation9 + $0x30] sm:$0xff] }
  0x7a   : > { %787 = vmatprep.subr.mxu0 %v1155_v2  ;;  %818 = vmatprep.subr.mxu1 %v1155_v2  ;;  %v451_v29 = vld [vmem:[#allocation9 + $0x28] sm:$0xff]  ;;  %v450_v30 = vld [vmem:[#allocation9 + $0x20] sm:$0xff]  ;;  %v449_v31 = vld [vmem:[#allocation9 + $0x18] sm:$0xff]  ;;  %p1054_p3 = por %p1053_p1, %p1052_p0 }
  0x7b   : > { %788 = vmatpush3.msra.mxu0 %v366_v6  ;;  %819 = vmatpush3.msra.mxu1 %v459_v21  ;;  %v448_v32 = vld [vmem:[#allocation9 + $0x10] sm:$0xff]  ;;  %v447_v33 = vld [vmem:[#allocation9 + $0x8] sm:$0xff]  ;;  %v446_v34 = vld [vmem:[#allocation9] sm:$0xff] }
  0x7c   : > { %789 = vmatprep.subr.mxu0 %v1155_v2  ;;  %820 = vmatprep.subr.mxu1 %v1155_v2  ;;  %v353_v35 = vld [vmem:[%s299_s2] sm:$0xff]  ;;  %p1055_p5 = pnand %p1054_p3, %p1048_p13 }
  0x7d   : > { %790 = vmatpush3.msra.mxu0 %v365_v7  ;;  %821 = vmatpush3.msra.mxu1 %v458_v22 }
  0x7e   : > { %791 = vmatprep.subr.mxu0 %v1155_v2  ;;  %822 = vmatprep.subr.mxu1 %v1155_v2 }
  0x7f   : > { %792 = vmatpush3.msra.mxu0 %v364_v8  ;;  %823 = vmatpush3.msra.mxu1 %v457_v23 }
  0x80   : > { %793 = vmatprep.subr.mxu0 %v1155_v2  ;;  %824 = vmatprep.subr.mxu1 %v1155_v2 }
  0x81   : > { %794 = vmatpush3.msra.mxu0 %v363_v9  ;;  %825 = vmatpush3.msra.mxu1 %v456_v24 }
  0x82   : > { %795 = vmatprep.subr.mxu0 %v1155_v2  ;;  %826 = vmatprep.subr.mxu1 %v1155_v2 }
  0x83   : > { %796 = vmatpush3.msra.mxu0 %v362_v10  ;;  %827 = vmatpush3.msra.mxu1 %v455_v25 }
  0x84   : > { %797 = vmatprep.subr.mxu0 %v1155_v2  ;;  %828 = vmatprep.subr.mxu1 %v1155_v2 }
  0x85   : > { %798 = vmatpush3.msra.mxu0 %v361_v11  ;;  %829 = vmatpush3.msra.mxu1 %v454_v26 }
  0x86   : > { %799 = vmatprep.subr.mxu0 %v1155_v2  ;;  %830 = vmatprep.subr.mxu1 %v1155_v2 }
  0x87   : > { %800 = vmatpush3.msra.mxu0 %v360_v12  ;;  %831 = vmatpush3.msra.mxu1 %v453_v27 }
  0x88   : > { %801 = vmatprep.subr.mxu0 %v1155_v2  ;;  %832 = vmatprep.subr.mxu1 %v1155_v2 }
  0x89   : > { %802 = vmatpush3.msra.mxu0 %v359_v13  ;;  %833 = vmatpush3.msra.mxu1 %v452_v28 }
  0x8a   : > { %803 = vmatprep.subr.mxu0 %v1155_v2  ;;  %834 = vmatprep.subr.mxu1 %v1155_v2 }
  0x8b   : > { %804 = vmatpush3.msra.mxu0 %v358_v14  ;;  %835 = vmatpush3.msra.mxu1 %v451_v29 }
  0x8c   : > { %805 = vmatprep.subr.mxu0 %v1155_v2  ;;  %836 = vmatprep.subr.mxu1 %v1155_v2 }
  0x8d   : > { %806 = vmatpush3.msra.mxu0 %v357_v15  ;;  %837 = vmatpush3.msra.mxu1 %v450_v30 }
  0x8e   : > { %807 = vmatprep.subr.mxu0 %v1155_v2  ;;  %838 = vmatprep.subr.mxu1 %v1155_v2 }
  0x8f   : > { %808 = vmatpush3.msra.mxu0 %v356_v16  ;;  %839 = vmatpush3.msra.mxu1 %v449_v31 }
  0x90   : > { %809 = vmatprep.subr.mxu0 %v1155_v2  ;;  %840 = vmatprep.subr.mxu1 %v1155_v2 }
  0x91   : > { %810 = vmatpush3.msra.mxu0 %v355_v17  ;;  %841 = vmatpush3.msra.mxu1 %v448_v32 }
  0x92   : > { %812 = vmatmul.mubr.f32.vlgmr.msra.gmra.mxu0 %v354_v18  ;;  %842 = vmatprep.subr.mxu1 %v1155_v2 }
  0x93   : > { %843 = vmatpush3.msra.mxu1 %v447_v33 }
  0x94   : > { %844 = vmatprep.subr.mxu1 %v1155_v2 }
  0x95   : > { %845 = vmatpush3.msra.mxu1 %v446_v34 }
 0x152   : > { %v437_v36 = vpop.f32.mrf.mxu0 }
 0x153   : > { %v441_v37 = vadd.f32 %v437_v36, %v353_v35 }
 0x154   : > { %v813_v38 = vpop.f32.mrf.mxu0 }
 0x155   : > { %935 = vtanh.f32 %v441_v37 }
 0x162   : > { %v936_v39 = vpop.eup %935 }
 0x163   : > { %937 = vtanh.f32 %v936_v39 }
 0x170   : > { %v938_v40 = vpop.eup %937 }
 0x171   : > { %444 = vst [vmem:[#allocation2] sm:$0xff] %v938_v40  ;;  %445 = vst [vmem:[%s339_s9] sm:$0xff] %v938_v40  ;;  %847 = vmatmul.mubr.f32.vlgmr.msra.gmra.mxu1 %v938_v40 }
 0x172   : > { %1058 = shalt.err (!%p1055_p5)
}
 0x173   : > { %s1059_s1 = scalar_lea.hbm %s576_s12, 128  ;;  %s1063_s10 = scalar_lea.hbm %s1458_s6, 1024 }
 0x174   : > { %p1060_p2 = scmp.ne.s32.totalorder %s576_s12, %s1059_s1  ;;  %p1064_p4 = scmp.lt.s32.totalorder %s576_s12, %s1458_s6 }
 0x175   : > { %p1065_p6 = scmp.lt.s32.totalorder %s1063_s10, %s1059_s1 }
 0x176   : > { %p1061_p8 = pnand %p1060_p2, %p1483_p7 }
 0x177   : > { %p1066_p9 = por %p1065_p6, %p1064_p4 }
 0x178   : > { %p1062_p11 = pneg %p1061_p8 }
 0x17a   : > { %p1067_p12 = pnand %p1066_p9, %p1062_p11 }
 0x17c   : > { %1070 = shalt.err (!%p1067_p12)
}
 0x17d   : > { %863 = dma.vmem_to_hbm [thread:$0]  (%p1483_p7), %s579_s20, 128, %s576_s12, %s560_s21   ;;  %v543_v41 = vlaneseq  ;;  %v738_v43 = vld [vmem:[%s1456_s4] ss:$0 sm:$0xff] }
 0x17e   : > { %v541_v44 = vld [vmem:[%s1457_s5] sm:$0x1]  ;;  %s591_s30 = sshll.u32 %s346_s23, 4  ;;  %s1484_s12 = sshll.u32 %s1220_s28, 7  ;;  %s592_s30 = int_to_ptr.vmem [resolvable:$true] %s591_s30 }
 0x17f   : > { %v544_v42 = vshrl.u32 %v543_v41, 7  ;;  %v549_v46 = vsub.f32 1.0, %v541_v44  ;;  %s589_s1 = scalar_lea.hbm %s1459_s7, %s1484_s12  ;;  %s565_s2 = scalar_lea.sflag [#allocation13], %s1325_s15 }
 0x180   : > { %s1071_s9 = scalar_lea.vmem %s592_s30, 128  ;;  %s1158_s10 = smov [#allocation12]  }
 0x181   : > { %v545_v45 = vsub.s32 0, %v544_v42  ;;  %p1072_p10 = scmp.ne.s32.totalorder %s592_s30, %s1071_s9  ;;  %s1075_s11 = sshll.u32 %s1158_s10, 4  ;;  %s1076_s11 = int_to_ptr.vmem [resolvable:$false] %s1075_s11 }
 0x182   : > { %s1077_s22 = scalar_lea.vmem %s1076_s11, 256  ;;  %p1078_p1 = scmp.lt.s32.totalorder %s592_s30, %s1076_s11 }
 0x183   : > { %v546_v51 = vrot.slane %v541_v44, %v545_v45  ;;  %v554_v52 = vrot.slane %v549_v46, %v545_v45  ;;  %p1073_p13 = pnand %p1072_p10, %p1483_p7  ;;  %p1079_p3 = scmp.lt.s32.totalorder %s1077_s22, %s1071_s9 }
 0x185   : > { %p1074_p0 = pneg %p1073_p13  ;;  %p1080_p5 = por %p1079_p3, %p1078_p1 }
 0x187   : > { %p1081_p2 = pnand %p1080_p5, %p1074_p0 }
 0x231   : > { %v535_v47 = vpop.f32.mrf.mxu1 }
 0x232   : > { %v536_v48 = vadd.f32 %v738_v43, %v535_v47 }
 0x233   : > { %v848_v49 = vpop.f32.mrf.mxu1 }
 0x234   : > { %v539_v50 = vmax.f32 %v536_v48, 0.0  ;;  %v548_v54 = vmul.f32 %v546_v51, %v536_v48 }
 0x236   : > { %v540_v53 = vadd.f32 1e-07, %v539_v50 }
 0x238   : > { %v556_v55 = vmul.f32 %v554_v52, %v540_v53 }
 0x23a   : > { %v557_v56 = vadd.f32 %v556_v55, %v548_v54 }
 0x23c   : > { %558 = vst [vmem:[%s346_s23] sm:$0xff] %v557_v56 }
 0x23d   : > { %1084 = shalt.err (!%p1081_p2)
}
 0x23e   : > { %s1085_s28 = scalar_lea.hbm %s589_s1, 128  ;;  %s1089_s23 = scalar_lea.hbm %s1459_s7, 1024 }
 0x23f   : > { %p1086_p8 = scmp.ne.s32.totalorder %s589_s1, %s1085_s28  ;;  %p1090_p6 = scmp.lt.s32.totalorder %s589_s1, %s1459_s7 }
 0x240   : > { %p1091_p9 = scmp.lt.s32.totalorder %s1089_s23, %s1085_s28 }
 0x241   : > { %p1087_p11 = pnand %p1086_p8, %p1483_p7 }
 0x242   : > { %p1092_p12 = por %p1091_p9, %p1090_p6 }
 0x243   : > { %p1088_p4 = pneg %p1087_p11 }
 0x245   : > { %p1093_p10 = pnand %p1092_p12, %p1088_p4 }
 0x247   : > { %1096 = shalt.err (!%p1093_p10)
}
 0x248   : > { %864 = dma.vmem_to_hbm [thread:$0]  (%p1483_p7), %s592_s30, 128, %s589_s1, %s565_s2  }
 0x249 PF: > { %p895_p13 = scmp.ge.s32.totalorder %s1147_s27, 2  ;;  %s603_s19 = sand.u32 1, %s1135_s24  }
 0x24a   : > { %p1485_p0 = scmp.ne.s32.totalorder %s1468_s8, 0  ;;  %s604_s12 = scalar_lea.sflag [#allocation5], %s603_s19 }
 0x24c   : > { %p882_p1 = pnand %p895_p13, %p1485_p0 }
 0x24e   : > { %p883_p3 = pneg %p882_p1 }
 0x250   : > { %1126 = dma.done.wait (%p883_p3), %s604_s12, 128  }
 0x251   : > { %1128 = vsyncadd (%p883_p3), %s604_s12, 4294967168  ;;  %s613_s20 = scalar_lea.sflag [#allocation13], %s603_s19 }
 0x252   : > { %1130 = dma.done.wait (%p883_p3), %s613_s20, 128  }
 0x253   : > { %1132 = vsyncadd (%p883_p3), %s613_s20, 4294967168  ;;  %p26_p7 = scmp.ge.s32.totalorder %s1279_s13, 10   ;;  %s1486_s24 = smov %s1139_s25 }
 0x254   : > { %s1487_s25 = smov %s1143_s26  ;;  %s1488_s26 = smov %s1289_s17 }
 0x255   : > { %s1489_s27 = smov %s1279_s13  ;;  %28 = sbr.rel (!%p26_p7) target bundleno = 12 (0xc), region = 122 }
 0x25a   :  { %618 = vsyncpa [#allocation4], 1 }
 0x25b   :  { %620 = vsyncpa [#allocation4 + $0x1], 1 }
 0x25c   :  { %621 = vsyncpa [#allocation7], 1 }
 0x25d   :  { %622 = vsyncpa [#allocation10], 1 }
 0x25e   :  { %623 = vsyncpa [#allocation5], 1 }
 0x25f   :  { %625 = vsyncpa [#allocation5 + $0x1], 1 }
 0x260   :  { %626 = vsyncpa [#allocation13], 1 }
 0x261   :  { %628 = vsyncpa [#allocation13 + $0x1], 1 }

</bundles_post_ra>
